<compile_context>
chip_gen: v5e
topology: v5e:2x2
jax: 0.10.0
libtpu: 0.0.40
codegen_flags: <defaults>
</compile_context>

<pallas_src>
import functools

import jax
import jax.numpy as jnp
from jax.experimental import pallas as pl
from jax.experimental.pallas import tpu as pltpu


def _round_up(n: int, m: int) -> int:
    return ((n + m - 1) // m) * m


def _cdiv(a: int, b: int) -> int:
    return -(-a // b)


def _pad2d(a, shape, dtype):
    """Cast to dtype and zero-pad up to `shape`; no copy if already aligned."""
    a = a.astype(dtype)
    if tuple(a.shape) == tuple(shape):
        return a
    pad = [(0, t - s) for s, t in zip(a.shape, shape)]
    return jnp.pad(a, pad)


def ann_kernel(x_ref, w1_ref, b1_ref, w2_ref, b2_ref, o_ref, *, out_valid: int):
    """One batch tile: (x @ W1 + b1) @ W2 + b2 -> log_softmax over last axis."""
    # x already arrives in the matmul dtype (bf16 or f32); accumulate in f32.
    h = jnp.dot(x_ref[...], w1_ref[...], preferred_element_type=jnp.float32)
    h = h + b1_ref[...]                        # f32 bias add (broadcast over batch)

    logits = jnp.dot(h.astype(w2_ref.dtype), w2_ref[...],
                     preferred_element_type=jnp.float32)
    logits = logits + b2_ref[...]              # f32 bias add

    # Mask padded output columns so they don't perturb the softmax
    # (trace-time skip when no padding was needed).
    if out_valid != logits.shape[-1]:
        col = jax.lax.broadcasted_iota(jnp.int32, logits.shape, dimension=1)
        logits = jnp.where(col < out_valid, logits, jnp.float32(-1e30))

    # Numerically stable log-softmax over the last axis, all in f32.
    m = jnp.max(logits, axis=-1, keepdims=True)
    shifted = logits - m
    s = jnp.sum(jnp.exp(shifted), axis=-1, keepdims=True)
    o_ref[...] = (shifted - jnp.log(s)).astype(o_ref.dtype)


def ann_forward(x, w1, b1, w2, b2, *, use_bf16_matmul=True, batch_tile=512,
                out_dtype=jnp.float32):
    """x: (B, In); w1: (In, H); b1: (1, H) or (H,); w2: (H, Out); b2: (1, Out) or (Out,)."""
    B, In = x.shape
    _, H = w1.shape
    _, Out = w2.shape

    # Lane-aligned padded feature sizes.
    In_p = _round_up(In, 128)
    H_p = _round_up(H, 128)
    Out_p = _round_up(Out, 128)

    # Batch tiling: pick TB <= batch_tile (multiple of 8), then rebalance so a
    # ragged batch never computes a whole extra all-zero tile (waste < 8 rows
    # plus tile rounding instead of up to TB-1 rows).
    B8 = _round_up(max(B, 1), 8)
    TB = min(_round_up(batch_tile, 8), B8)
    num_tiles = _cdiv(B8, TB)
    TB = _round_up(_cdiv(B8, num_tiles), 8)
    B_p = num_tiles * TB

    w_dtype = jnp.bfloat16 if use_bf16_matmul else jnp.float32
    wbytes = jnp.dtype(w_dtype).itemsize
    obytes = jnp.dtype(out_dtype).itemsize

    # Zero-pad (and cast) inputs/weights.  Padded x columns / W1 rows contribute
    # 0; padded hidden columns are exactly 0 (zero W1 cols + zero b1) and hit
    # zero W2 rows, so only padded OUTPUT columns need in-kernel masking.
    # Padding copies are skipped when shapes are already aligned.
    x_p = _pad2d(x, (B_p, In_p), w_dtype)
    w1_p = _pad2d(w1, (In_p, H_p), w_dtype)
    b1_p = _pad2d(jnp.reshape(b1, (1, -1)), (1, H_p), jnp.float32)
    w2_p = _pad2d(w2, (H_p, Out_p), w_dtype)
    b2_p = _pad2d(jnp.reshape(b2, (1, -1)), (1, Out_p), jnp.float32)

    cost = pl.CostEstimate(
        flops=2 * B_p * (In_p * H_p + H_p * Out_p),
        transcendentals=B_p * (Out_p + 1),
        bytes_accessed=(B_p * In_p * wbytes
                        + (In_p * H_p + H_p * Out_p) * wbytes
                        + (H_p + Out_p) * 4
                        + B_p * Out_p * obytes),
    )

    # VMEM need: double-buffered x/out tiles, resident weights (conservatively
    # counted at 2 buffers in case single-buffering is unavailable), biases,
    # and the live f32 intermediates.
    need = (2 * TB * In_p * wbytes
            + 2 * TB * Out_p * obytes
            + 2 * (In_p * H_p + H_p * Out_p) * wbytes
            + 2 * (H_p + Out_p) * 4
            + TB * (H_p + 2 * Out_p) * 4)

    # Generation-aware VMEM budget: never exceed the chip's physical VMEM
    # (64 MiB/TC on v7x, 128 MiB on v5e/v6e).
    try:
        vmem_cap = int(pltpu.get_tpu_info().vmem_capacity_bytes)
    except Exception:  # pragma: no cover - conservative fallback
        vmem_cap = 64 << 20
    vmem_limit = min(int(0.85 * vmem_cap), max(32 << 20, 2 * need))
    vmem_limit = max(vmem_limit, 16 << 20)

    def _call(weight_pipeline_mode):
        return pl.pallas_call(
            functools.partial(ann_kernel, out_valid=Out),
            out_shape=jax.ShapeDtypeStruct((B_p, Out_p), out_dtype),
            grid=(num_tiles,),
            in_specs=[
                # x tile: streams (auto double-buffered) per grid step.
                pl.BlockSpec((TB, In_p), lambda i: (i, 0)),
                # Weights/biases: constant index -> resident; single-buffered
                # when supported to halve their VMEM footprint.
                pl.BlockSpec((In_p, H_p), lambda i: (0, 0),
                             pipeline_mode=weight_pipeline_mode),
                pl.BlockSpec((1, H_p), lambda i: (0, 0),
                             pipeline_mode=weight_pipeline_mode),
                pl.BlockSpec((H_p, Out_p), lambda i: (0, 0),
                             pipeline_mode=weight_pipeline_mode),
                pl.BlockSpec((1, Out_p), lambda i: (0, 0),
                             pipeline_mode=weight_pipeline_mode),
            ],
            out_specs=pl.BlockSpec((TB, Out_p), lambda i: (i, 0)),
            compiler_params=pltpu.CompilerParams(
                dimension_semantics=("parallel",),
                vmem_limit_bytes=vmem_limit,
            ),
            cost_estimate=cost,
        )(x_p, w1_p, b1_p, w2_p, b2_p)

    try:
        out_p = _call(pl.Buffered(1))
    except Exception:
        # Fallback for jax versions that reject single-buffering on the main
        # pallas_call pipeline; default double-buffering is still correct.
        out_p = _call(None)

    return out_p[:B, :Out]


def init_params(key, input_size, hidden_size, output_size):
    # Deterministic synthetic init mimicking nn.Linear's U(-1/sqrt(fan_in), 1/sqrt(fan_in)).
    k1, k2, k3, k4 = jax.random.split(key, 4)
    lim1 = 1.0 / jnp.sqrt(jnp.float32(input_size))
    lim2 = 1.0 / jnp.sqrt(jnp.float32(hidden_size))
    w1 = jax.random.uniform(k1, (input_size, hidden_size), jnp.float32, -lim1, lim1)
    b1 = jax.random.uniform(k2, (1, hidden_size), jnp.float32, -lim1, lim1)
    w2 = jax.random.uniform(k3, (hidden_size, output_size), jnp.float32, -lim2, lim2)
    b2 = jax.random.uniform(k4, (1, output_size), jnp.float32, -lim2, lim2)
    return w1, b1, w2, b2


if __name__ == "__main__":
    # Small shapes consistent with the module's forward: 2-D input (batch, input_size).
    batch, input_size, hidden_size, output_size = 8, 32, 32, 16

    key = jax.random.PRNGKey(0)
    kx, kp = jax.random.split(key)
    x = jax.random.normal(kx, (batch, input_size), jnp.float32)
    w1, b1, w2, b2 = init_params(kp, input_size, hidden_size, output_size)

    # --- mixed-precision (bf16 matmul / f32 accumulate) path ---
    out_bf16 = jax.block_until_ready(
        ann_forward(x, w1, b1, w2, b2, use_bf16_matmul=True))
    # Reference performing the same mixed-precision math.
    h_ref = jnp.dot(x.astype(jnp.bfloat16), w1.astype(jnp.bfloat16),
                    preferred_element_type=jnp.float32) + b1
    logits_ref = jnp.dot(h_ref.astype(jnp.bfloat16), w2.astype(jnp.bfloat16),
                         preferred_element_type=jnp.float32) + b2
    ref_bf16 = jax.nn.log_softmax(logits_ref, axis=-1)
    assert jnp.allclose(out_bf16, ref_bf16, atol=2e-3, rtol=2e-3), \
        "mismatch vs mixed-precision reference"

    # --- pure f32 path (exact check against the PyTorch-equivalent math) ---
    out_f32 = jax.block_until_ready(
        ann_forward(x, w1, b1, w2, b2, use_bf16_matmul=False))
    ref_f32 = jax.nn.log_softmax((x @ w1 + b1) @ w2 + b2, axis=-1)
    assert jnp.allclose(out_f32, ref_f32, atol=1e-5, rtol=1e-5), \
        "mismatch vs f32 reference"

    print("KERNEL_OK")
</pallas_src>

<mosaic_0001>
module attributes {stable_mosaic.version = 11 : i64} {
  func.func @ann_kernel(%arg0: i32, %arg1: memref<8x128xbf16, #tpu.memory_space<vmem>>, %arg2: memref<128x128xbf16, #tpu.memory_space<vmem>>, %arg3: memref<1x128xf32, #tpu.memory_space<vmem>>, %arg4: memref<128x128xbf16, #tpu.memory_space<vmem>>, %arg5: memref<1x128xf32, #tpu.memory_space<vmem>>, %arg6: memref<8x128xf32, #tpu.memory_space<vmem>>) attributes {dimension_semantics = [#tpu.dimension_semantics<parallel>], iteration_bounds = array<i64: 1>, scalar_prefetch = 0 : i64, scratch_operands = 0 : i64, tpu.core_type = #tpu.core_type<tc>, window_params = [{transform_indices = @transform_0, window_bounds = array<i64: 8, 128>}, {pipeline_mode = #tpu.pipeline_mode<synchronous>, transform_indices = @transform_1, window_bounds = array<i64: 128, 128>}, {pipeline_mode = #tpu.pipeline_mode<synchronous>, transform_indices = @transform_2, window_bounds = array<i64: 1, 128>}, {pipeline_mode = #tpu.pipeline_mode<synchronous>, transform_indices = @transform_3, window_bounds = array<i64: 128, 128>}, {pipeline_mode = #tpu.pipeline_mode<synchronous>, transform_indices = @transform_4, window_bounds = array<i64: 1, 128>}, {transform_indices = @transform_5, window_bounds = array<i64: 8, 128>}]} {
    %c0 = arith.constant 0 : index
    %c0_0 = arith.constant 0 : index
    %0 = vector.load %arg1[%c0, %c0_0] : memref<8x128xbf16, #tpu.memory_space<vmem>>, vector<8x128xbf16>
    %c0_1 = arith.constant 0 : index
    %c0_2 = arith.constant 0 : index
    %1 = vector.load %arg2[%c0_1, %c0_2] : memref<128x128xbf16, #tpu.memory_space<vmem>>, vector<128x128xbf16>
    %cst = arith.constant dense<0.000000e+00> : vector<8x128xf32>
    %2 = tpu.matmul %0, %1, %cst {dimension_numbers = #tpu.dot_dimension_numbers<[1], [0], [0], [1], [0, 0, 1, 1], [], []>} : vector<8x128xbf16>, vector<128x128xbf16>, vector<8x128xf32> -> vector<8x128xf32>
    %c0_3 = arith.constant 0 : index
    %c0_4 = arith.constant 0 : index
    %3 = vector.load %arg3[%c0_3, %c0_4] : memref<1x128xf32, #tpu.memory_space<vmem>>, vector<1x128xf32>
    %4 = vector.broadcast %3 : vector<1x128xf32> to vector<8x128xf32>
    %5 = arith.addf %2, %4 : vector<8x128xf32>
    %6 = arith.truncf %5 : vector<8x128xf32> to vector<8x128xbf16>
    %c0_5 = arith.constant 0 : index
    %c0_6 = arith.constant 0 : index
    %7 = vector.load %arg4[%c0_5, %c0_6] : memref<128x128xbf16, #tpu.memory_space<vmem>>, vector<128x128xbf16>
    %cst_7 = arith.constant dense<0.000000e+00> : vector<8x128xf32>
    %8 = tpu.matmul %6, %7, %cst_7 {dimension_numbers = #tpu.dot_dimension_numbers<[1], [0], [0], [1], [0, 0, 1, 1], [], []>} : vector<8x128xbf16>, vector<128x128xbf16>, vector<8x128xf32> -> vector<8x128xf32>
    %c0_8 = arith.constant 0 : index
    %c0_9 = arith.constant 0 : index
    %9 = vector.load %arg5[%c0_8, %c0_9] : memref<1x128xf32, #tpu.memory_space<vmem>>, vector<1x128xf32>
    %10 = vector.broadcast %9 : vector<1x128xf32> to vector<8x128xf32>
    %11 = arith.addf %8, %10 : vector<8x128xf32>
    %12 = tpu.iota {dimensions = array<i32: 1>} : vector<8x128xi32>
    %c16_i32 = arith.constant 16 : i32
    %13 = vector.broadcast %c16_i32 : i32 to vector<8x128xi32>
    %14 = arith.cmpi slt, %12, %13 : vector<8x128xi32>
    %cst_10 = arith.constant -1.000000e+30 : f32
    %15 = vector.broadcast %cst_10 : f32 to vector<8x128xf32>
    %16 = arith.select %14, %11, %15 : vector<8x128xi1>, vector<8x128xf32>
    %cst_11 = arith.constant dense<0xFF800000> : vector<8xf32>
    %17 = vector.multi_reduction <maximumf>, %16, %cst_11 [1] : vector<8x128xf32> to vector<8xf32>
    %18 = vector.shape_cast %17 : vector<8xf32> to vector<8x1xf32>
    %19 = vector.broadcast %18 : vector<8x1xf32> to vector<8x128xf32>
    %20 = arith.subf %16, %19 : vector<8x128xf32>
    %21 = math.exp %20 : vector<8x128xf32>
    %cst_12 = arith.constant dense<0.000000e+00> : vector<8xf32>
    %22 = vector.multi_reduction <add>, %21, %cst_12 [1] : vector<8x128xf32> to vector<8xf32>
    %23 = vector.shape_cast %22 : vector<8xf32> to vector<8x1xf32>
    %24 = math.log %23 : vector<8x1xf32>
    %25 = vector.broadcast %24 : vector<8x1xf32> to vector<8x128xf32>
    %26 = arith.subf %20, %25 : vector<8x128xf32>
    %c0_13 = arith.constant 0 : index
    %c0_14 = arith.constant 0 : index
    %27 = vector.load %arg6[%c0_13, %c0_14] : memref<8x128xf32, #tpu.memory_space<vmem>>, vector<8x128xf32>
    tpu.vector_store %arg6[%c0_13, %c0_14], %26 {strides = array<i32>} : memref<8x128xf32, #tpu.memory_space<vmem>>, vector<8x128xf32>,
    return
  }
  func.func @transform_0(%arg0: i32) -> (i32, i32) {
    %c0_i32 = arith.constant 0 : i32
    %c0_i32_0 = arith.constant 0 : i32
    return %arg0, %c0_i32 : i32, i32
  }
  func.func @transform_1(%arg0: i32) -> (i32, i32) {
    %c0_i32 = arith.constant 0 : i32
    %c0_i32_0 = arith.constant 0 : i32
    %c0_i32_1 = arith.constant 0 : i32
    return %c0_i32, %c0_i32_0 : i32, i32
  }
  func.func @transform_2(%arg0: i32) -> (i32, i32) {
    %c0_i32 = arith.constant 0 : i32
    %c0_i32_0 = arith.constant 0 : i32
    %c0_i32_1 = arith.constant 0 : i32
    return %c0_i32, %c0_i32_0 : i32, i32
  }
  func.func @transform_3(%arg0: i32) -> (i32, i32) {
    %c0_i32 = arith.constant 0 : i32
    %c0_i32_0 = arith.constant 0 : i32
    %c0_i32_1 = arith.constant 0 : i32
    return %c0_i32, %c0_i32_0 : i32, i32
  }
  func.func @transform_4(%arg0: i32) -> (i32, i32) {
    %c0_i32 = arith.constant 0 : i32
    %c0_i32_0 = arith.constant 0 : i32
    %c0_i32_1 = arith.constant 0 : i32
    return %c0_i32, %c0_i32_0 : i32, i32
  }
  func.func @transform_5(%arg0: i32) -> (i32, i32) {
    %c0_i32 = arith.constant 0 : i32
    %c0_i32_0 = arith.constant 0 : i32
    return %arg0, %c0_i32 : i32, i32
  }
}

module attributes {stable_mosaic.version = 11 : i64} {
  func.func @ann_kernel(%arg0: i32, %arg1: memref<8x128xbf16, #tpu.memory_space<vmem>>, %arg2: memref<128x128xbf16, #tpu.memory_space<vmem>>, %arg3: memref<1x128xf32, #tpu.memory_space<vmem>>, %arg4: memref<128x128xbf16, #tpu.memory_space<vmem>>, %arg5: memref<1x128xf32, #tpu.memory_space<vmem>>, %arg6: memref<8x128xf32, #tpu.memory_space<vmem>>) attributes {dimension_semantics = [#tpu.dimension_semantics<parallel>], iteration_bounds = array<i64: 1>, scalar_prefetch = 0 : i64, scratch_operands = 0 : i64, tpu.core_type = #tpu.core_type<tc>, window_params = [{transform_indices = @transform_0, window_bounds = array<i64: 8, 128>}, {pipeline_mode = #tpu.pipeline_mode<synchronous>, transform_indices = @transform_1, window_bounds = array<i64: 128, 128>}, {pipeline_mode = #tpu.pipeline_mode<synchronous>, transform_indices = @transform_2, window_bounds = array<i64: 1, 128>}, {pipeline_mode = #tpu.pipeline_mode<synchronous>, transform_indices = @transform_3, window_bounds = array<i64: 128, 128>}, {pipeline_mode = #tpu.pipeline_mode<synchronous>, transform_indices = @transform_4, window_bounds = array<i64: 1, 128>}, {transform_indices = @transform_5, window_bounds = array<i64: 8, 128>}]} {
    %c0 = arith.constant 0 : index
    %c0_0 = arith.constant 0 : index
    %0 = vector.load %arg1[%c0, %c0_0] : memref<8x128xbf16, #tpu.memory_space<vmem>>, vector<8x128xbf16>
    %c0_1 = arith.constant 0 : index
    %c0_2 = arith.constant 0 : index
    %1 = vector.load %arg2[%c0_1, %c0_2] : memref<128x128xbf16, #tpu.memory_space<vmem>>, vector<128x128xbf16>
    %cst = arith.constant dense<0.000000e+00> : vector<8x128xf32>
    %2 = tpu.matmul %0, %1, %cst {dimension_numbers = #tpu.dot_dimension_numbers<[1], [0], [0], [1], [0, 0, 1, 1], [], []>} : vector<8x128xbf16>, vector<128x128xbf16>, vector<8x128xf32> -> vector<8x128xf32>
    %c0_3 = arith.constant 0 : index
    %c0_4 = arith.constant 0 : index
    %3 = vector.load %arg3[%c0_3, %c0_4] : memref<1x128xf32, #tpu.memory_space<vmem>>, vector<1x128xf32>
    %4 = vector.broadcast %3 : vector<1x128xf32> to vector<8x128xf32>
    %5 = arith.addf %2, %4 : vector<8x128xf32>
    %6 = arith.truncf %5 : vector<8x128xf32> to vector<8x128xbf16>
    %c0_5 = arith.constant 0 : index
    %c0_6 = arith.constant 0 : index
    %7 = vector.load %arg4[%c0_5, %c0_6] : memref<128x128xbf16, #tpu.memory_space<vmem>>, vector<128x128xbf16>
    %cst_7 = arith.constant dense<0.000000e+00> : vector<8x128xf32>
    %8 = tpu.matmul %6, %7, %cst_7 {dimension_numbers = #tpu.dot_dimension_numbers<[1], [0], [0], [1], [0, 0, 1, 1], [], []>} : vector<8x128xbf16>, vector<128x128xbf16>, vector<8x128xf32> -> vector<8x128xf32>
    %c0_8 = arith.constant 0 : index
    %c0_9 = arith.constant 0 : index
    %9 = vector.load %arg5[%c0_8, %c0_9] : memref<1x128xf32, #tpu.memory_space<vmem>>, vector<1x128xf32>
    %10 = vector.broadcast %9 : vector<1x128xf32> to vector<8x128xf32>
    %11 = arith.addf %8, %10 : vector<8x128xf32>
    %12 = tpu.iota {dimensions = array<i32: 1>} : vector<8x128xi32>
    %c16_i32 = arith.constant 16 : i32
    %13 = vector.broadcast %c16_i32 : i32 to vector<8x128xi32>
    %14 = arith.cmpi slt, %12, %13 : vector<8x128xi32>
    %cst_10 = arith.constant -1.000000e+30 : f32
    %15 = vector.broadcast %cst_10 : f32 to vector<8x128xf32>
    %16 = arith.select %14, %11, %15 : vector<8x128xi1>, vector<8x128xf32>
    %cst_11 = arith.constant dense<0xFF800000> : vector<8xf32>
    %17 = vector.multi_reduction <maximumf>, %16, %cst_11 [1] : vector<8x128xf32> to vector<8xf32>
    %18 = vector.shape_cast %17 : vector<8xf32> to vector<8x1xf32>
    %19 = vector.broadcast %18 : vector<8x1xf32> to vector<8x128xf32>
    %20 = arith.subf %16, %19 : vector<8x128xf32>
    %21 = math.exp %20 : vector<8x128xf32>
    %cst_12 = arith.constant dense<0.000000e+00> : vector<8xf32>
    %22 = vector.multi_reduction <add>, %21, %cst_12 [1] : vector<8x128xf32> to vector<8xf32>
    %23 = vector.shape_cast %22 : vector<8xf32> to vector<8x1xf32>
    %24 = math.log %23 : vector<8x1xf32>
    %25 = vector.broadcast %24 : vector<8x1xf32> to vector<8x128xf32>
    %26 = arith.subf %20, %25 : vector<8x128xf32>
    %c0_13 = arith.constant 0 : index
    %c0_14 = arith.constant 0 : index
    %27 = vector.load %arg6[%c0_13, %c0_14] : memref<8x128xf32, #tpu.memory_space<vmem>>, vector<8x128xf32>
    tpu.vector_store %arg6[%c0_13, %c0_14], %26 {strides = array<i32>} : memref<8x128xf32, #tpu.memory_space<vmem>>, vector<8x128xf32>,
    return
  }
  func.func @transform_0(%arg0: i32) -> (i32, i32) {
    %c0_i32 = arith.constant 0 : i32
    %c0_i32_0 = arith.constant 0 : i32
    return %arg0, %c0_i32 : i32, i32
  }
  func.func @transform_1(%arg0: i32) -> (i32, i32) {
    %c0_i32 = arith.constant 0 : i32
    %c0_i32_0 = arith.constant 0 : i32
    %c0_i32_1 = arith.constant 0 : i32
    return %c0_i32, %c0_i32_0 : i32, i32
  }
  func.func @transform_2(%arg0: i32) -> (i32, i32) {
    %c0_i32 = arith.constant 0 : i32
    %c0_i32_0 = arith.constant 0 : i32
    %c0_i32_1 = arith.constant 0 : i32
    return %c0_i32, %c0_i32_0 : i32, i32
  }
  func.func @transform_3(%arg0: i32) -> (i32, i32) {
    %c0_i32 = arith.constant 0 : i32
    %c0_i32_0 = arith.constant 0 : i32
    %c0_i32_1 = arith.constant 0 : i32
    return %c0_i32, %c0_i32_0 : i32, i32
  }
  func.func @transform_4(%arg0: i32) -> (i32, i32) {
    %c0_i32 = arith.constant 0 : i32
    %c0_i32_0 = arith.constant 0 : i32
    %c0_i32_1 = arith.constant 0 : i32
    return %c0_i32, %c0_i32_0 : i32, i32
  }
  func.func @transform_5(%arg0: i32) -> (i32, i32) {
    %c0_i32 = arith.constant 0 : i32
    %c0_i32_0 = arith.constant 0 : i32
    return %arg0, %c0_i32 : i32, i32
  }
}

</mosaic_0001>

<bundles_post_ra>
// kernel: tpu_custom_call.1
= control target key start
LH: loop header
LB: loop body
LE: loop exit
PB: predicated region body
PF: predicated region fallthrough
CT: control target
= control target key end

     0   :  { %10 = vsyncpa [#allocation3], 0  ;;  %s511_s0 = inlined_call_operand.hbm [shape: bf16[8,128], index: 0, kind: input, shape index: {}]   ;;  %s512_s1 = inlined_call_operand.hbm [shape: bf16[128,128], index: 1, kind: input, shape index: {}]   ;;  %s513_s2 = inlined_call_operand.vmem [shape: f32[1,128], index: 2, kind: input, shape index: {}]   ;;  %s514_s3 = inlined_call_operand.hbm [shape: bf16[128,128], index: 3, kind: input, shape index: {}]   ;;  %s515_s4 = inlined_call_operand.vmem [shape: f32[1,128], index: 4, kind: input, shape index: {}]   ;;  %s516_s5 = inlined_call_operand.hbm [shape: f32[8,128], index: 5, kind: output, shape index: {}]  }
   0x1   :  { %11 = vsyncpa [#allocation6], 0  ;;  %s28_s20 = sshll.u32 %s512_s1, 4  ;;  %s29_s20 = int_to_ptr.hbm [resolvable:$true] %s28_s20 }
   0x2   :  { %12 = vsyncpa [#allocation4], 0  ;;  %s457_s21 = smov [#allocation5]   ;;  %s18_s25 = sshll.u32 %s511_s0, 4  ;;  %s19_s25 = int_to_ptr.hbm [resolvable:$true] %s18_s25 }
   0x3   :  { %s30_s22 = sshll.u32 %s457_s21, 4  ;;  %s458_s26 = smov 64   ;;  %s31_s22 = int_to_ptr.vmem [resolvable:$true] %s30_s22 }
   0x4   :  { %s459_s27 = smov 4   ;;  %s460_s28 = smov [#allocation2]  }
   0x5   :  { %36 = dma.hbm_to_vmem [thread:$0]  %s29_s20, 1024, %s31_s22, [#allocation6], %s458_s26, %s458_s26, %s459_s27  }
   0x6   :  { %s20_s29 = sshll.u32 %s460_s28, 4  ;;  %s43_s7 = sshll.u32 %s514_s3, 4  ;;  %s21_s29 = int_to_ptr.vmem [resolvable:$true] %s20_s29  ;;  %s44_s7 = int_to_ptr.hbm [resolvable:$true] %s43_s7 }
   0x7   :  { %23 = dma.hbm_to_vmem [thread:$0]  %s19_s25, 64, %s21_s29, [#allocation3]  }
   0x8   :  { %s461_s1 = smov [#allocation7]  }
   0x9   :  { %s45_s8 = sshll.u32 %s461_s1, 4  ;;  %s46_s8 = int_to_ptr.vmem [resolvable:$true] %s45_s8 }
   0xa   :  { %51 = dma.hbm_to_vmem [thread:$0]  %s44_s7, 1024, %s46_s8, [#allocation6], %s458_s26, %s458_s26, %s459_s27  }
   0xb   :  { %451 = dma.done.wait [#allocation3], 64  }
   0xc   :  { %452 = vsyncadd [#allocation3], 4294967232 }
   0xd   :  { %453 = dma.done.wait [#allocation6], 2048  }
   0xe   :  { %454 = vsyncadd [#allocation6], 4294965248  ;;  %v334_v0 = vld [vmem:[#allocation5 + $0x38] sm:$0xff]  ;;  %v333_v1 = vld [vmem:[#allocation5 + $0x30] sm:$0xff]  ;;  %v230_v22 = vlaneseq }
   0xf   :  { %135 = vmatpush.bf16.msra.mxu0 %v334_v0  ;;  %v342_v2 = vld [vmem:[#allocation7 + $0x38] sm:$0xff]  ;;  %v341_v3 = vld [vmem:[#allocation7 + $0x30] sm:$0xff]  ;;  %v332_v4 = vld [vmem:[#allocation5 + $0x28] sm:$0xff] }
  0x10   :  { %217 = vmatpush.bf16.msra.mxu1 %v342_v2  ;;  %v340_v5 = vld [vmem:[#allocation7 + $0x28] sm:$0xff]  ;;  %v331_v6 = vld [vmem:[#allocation5 + $0x20] sm:$0xff]  ;;  %v330_v8 = vld [vmem:[#allocation5 + $0x18] sm:$0xff]  ;;  %v231_v23 = vand.u32 127, %v230_v22 }
  0x11   :  { %v339_v7 = vld [vmem:[#allocation7 + $0x20] sm:$0xff]  ;;  %v338_v9 = vld [vmem:[#allocation7 + $0x18] sm:$0xff]  ;;  %v329_v10 = vld [vmem:[#allocation5 + $0x10] sm:$0xff] }
  0x12   :  { %v337_v11 = vld [vmem:[#allocation7 + $0x10] sm:$0xff]  ;;  %v328_v12 = vld [vmem:[#allocation5 + $0x8] sm:$0xff]  ;;  %v327_v14 = vld [vmem:[#allocation5] sm:$0xff]  ;;  %vm232_vm0 = vcmp.lt.s32.totalorder %v231_v23, 16 }
  0x13   :  { %136 = vmatpush.bf16.msra.mxu0 %v333_v1  ;;  %v336_v13 = vld [vmem:[#allocation7 + $0x8] sm:$0xff]  ;;  %v66_v15 = vld [vmem:[#allocation2] sm:$0xf]  ;;  %v335_v16 = vld [vmem:[#allocation7] sm:$0xff] }
  0x14   :  { %218 = vmatpush.bf16.msra.mxu1 %v341_v3  ;;  %v349_v17 = vld [vmem:[%s513_s2] ss:$0 sm:$0xff]  ;;  %s462_s2 = smov [#allocation8]  }
  0x15   :  { %v350_v24 = vld [vmem:[%s515_s4] ss:$0 sm:$0xff]  ;;  %s250_s11 = sshll.u32 %s462_s2, 4  ;;  %s252_s4 = sshll.u32 %s516_s5, 4  ;;  %s251_s11 = int_to_ptr.vmem [resolvable:$true] %s250_s11  ;;  %s253_s4 = int_to_ptr.hbm [resolvable:$true] %s252_s4 }
  0x17   :  { %137 = vmatpush.bf16.msra.mxu0 %v332_v4 }
  0x18   :  { %219 = vmatpush.bf16.msra.mxu1 %v340_v5 }
  0x1b   :  { %138 = vmatpush.bf16.msra.mxu0 %v331_v6 }
  0x1c   :  { %220 = vmatpush.bf16.msra.mxu1 %v339_v7 }
  0x1f   :  { %139 = vmatpush.bf16.msra.mxu0 %v330_v8 }
  0x20   :  { %221 = vmatpush.bf16.msra.mxu1 %v338_v9 }
  0x23   :  { %140 = vmatpush.bf16.msra.mxu0 %v329_v10 }
  0x24   :  { %222 = vmatpush.bf16.msra.mxu1 %v337_v11 }
  0x27   :  { %141 = vmatpush.bf16.msra.mxu0 %v328_v12 }
  0x28   :  { %223 = vmatpush.bf16.msra.mxu1 %v336_v13 }
  0x2b   :  { %142 = vmatpush.bf16.msra.mxu0 %v327_v14 }
  0x2c   :  { %224 = vmatpush.bf16.msra.mxu1 %v335_v16 }
  0x2e   :  { %143 = vmatmul.bf16.vlgmr.msra.gmra.mxu0 %v66_v15 }
  0xab   :  { %v144_v18 = vpop.f32.mrf.mxu0 }
  0xac   :  { %v145_v19 = vadd.f32 %v349_v17, %v144_v18 }
  0xae   :  { %v148_v20 = vpack.c.bf16 %v145_v19, %v145_v19 }
  0xb0   :  { %225 = vmatmul.bf16.vlgmr.msra.gmra.mxu1 %v148_v20 }
  0xb3   :  { %v146_v21 = vpop.f32.mrf.mxu0 }
 0x12d   :  { %v226_v25 = vpop.f32.mrf.mxu1 }
 0x12e   :  { %v227_v26 = vadd.f32 %v350_v24, %v226_v25 }
 0x130   :  { %v233_v27 = vsel %vm232_vm0, %v227_v26, -1e+30 }
 0x131   :  { %234 = vmax.xlane.f32.xlu0 %v233_v27 }
 0x135   :  { %v228_v28 = vpop.f32.mrf.mxu1 }
 0x1a4   :  { %v235_v29 = vpop.xlane.xlu0 %234 }
 0x1a5   :  { %v236_v30 = vsub.f32 %v233_v27, %v235_v29 }
 0x1a7   :  { %v237_v31 = vmul.f32 1.442695, %v236_v30 }
 0x1a9   :  { %351 = vpow2.f32 %v237_v31 }
 0x1af   :  { %v352_v32 = vpop.eup %351 }
 0x1b0   :  { %239 = vadd.xlane.f32.xlu0 %v352_v32 }
 0x223   :  { %v240_v33 = vpop.xlane.xlu0 %239 }
 0x224   :  { %353 = vlog2.f32 %v240_v33 }
 0x22a   :  { %v354_v34 = vpop.eup %353 }
 0x22b   :  { %v242_v35 = vmul.f32 0.6931472, %v354_v34 }
 0x22d   :  { %v243_v36 = vsub.f32 %v236_v30, %v242_v35 }
 0x22f   :  { %244 = vst [vmem:[#allocation8] sm:$0xff] %v243_v36 }
 0x230   :  { %255 = dma.vmem_to_hbm [thread:$0]  %s251_s11, 128, %s253_s4, [#allocation4]  }
 0x231   :  { %455 = dma.done.wait [#allocation4], 128  }
 0x232   :  { %456 = vsyncadd [#allocation4], 4294967168 }
 0x233   :  { %260 = vsyncpa [#allocation3], 1 }
 0x234   :  { %261 = vsyncpa [#allocation6], 1 }
 0x235   :  { %262 = vsyncpa [#allocation4], 1 }

// kernel: tpu_custom_call.1
= control target key start
LH: loop header
LB: loop body
LE: loop exit
PB: predicated region body
PF: predicated region fallthrough
CT: control target
= control target key end

     0   :  { %10 = vsyncpa [#allocation3], 0  ;;  %s511_s0 = inlined_call_operand.hbm [shape: bf16[8,128], index: 0, kind: input, shape index: {}]   ;;  %s512_s1 = inlined_call_operand.hbm [shape: bf16[128,128], index: 1, kind: input, shape index: {}]   ;;  %s513_s2 = inlined_call_operand.vmem [shape: f32[1,128], index: 2, kind: input, shape index: {}]   ;;  %s514_s3 = inlined_call_operand.hbm [shape: bf16[128,128], index: 3, kind: input, shape index: {}]   ;;  %s515_s4 = inlined_call_operand.vmem [shape: f32[1,128], index: 4, kind: input, shape index: {}]   ;;  %s516_s5 = inlined_call_operand.hbm [shape: f32[8,128], index: 5, kind: output, shape index: {}]  }
   0x1   :  { %11 = vsyncpa [#allocation6], 0  ;;  %s28_s20 = sshll.u32 %s512_s1, 4  ;;  %s29_s20 = int_to_ptr.hbm [resolvable:$true] %s28_s20 }
   0x2   :  { %12 = vsyncpa [#allocation4], 0  ;;  %s457_s21 = smov [#allocation5]   ;;  %s18_s25 = sshll.u32 %s511_s0, 4  ;;  %s19_s25 = int_to_ptr.hbm [resolvable:$true] %s18_s25 }
   0x3   :  { %s30_s22 = sshll.u32 %s457_s21, 4  ;;  %s458_s26 = smov 64   ;;  %s31_s22 = int_to_ptr.vmem [resolvable:$true] %s30_s22 }
   0x4   :  { %s459_s27 = smov 4   ;;  %s460_s28 = smov [#allocation2]  }
   0x5   :  { %36 = dma.hbm_to_vmem [thread:$0]  %s29_s20, 1024, %s31_s22, [#allocation6], %s458_s26, %s458_s26, %s459_s27  }
   0x6   :  { %s20_s29 = sshll.u32 %s460_s28, 4  ;;  %s43_s7 = sshll.u32 %s514_s3, 4  ;;  %s21_s29 = int_to_ptr.vmem [resolvable:$true] %s20_s29  ;;  %s44_s7 = int_to_ptr.hbm [resolvable:$true] %s43_s7 }
   0x7   :  { %23 = dma.hbm_to_vmem [thread:$0]  %s19_s25, 64, %s21_s29, [#allocation3]  }
   0x8   :  { %s461_s1 = smov [#allocation7]  }
   0x9   :  { %s45_s8 = sshll.u32 %s461_s1, 4  ;;  %s46_s8 = int_to_ptr.vmem [resolvable:$true] %s45_s8 }
   0xa   :  { %51 = dma.hbm_to_vmem [thread:$0]  %s44_s7, 1024, %s46_s8, [#allocation6], %s458_s26, %s458_s26, %s459_s27  }
   0xb   :  { %451 = dma.done.wait [#allocation3], 64  }
   0xc   :  { %452 = vsyncadd [#allocation3], 4294967232 }
   0xd   :  { %453 = dma.done.wait [#allocation6], 2048  }
   0xe   :  { %454 = vsyncadd [#allocation6], 4294965248  ;;  %v334_v0 = vld [vmem:[#allocation5 + $0x38] sm:$0xff]  ;;  %v333_v1 = vld [vmem:[#allocation5 + $0x30] sm:$0xff]  ;;  %v230_v22 = vlaneseq }
   0xf   :  { %135 = vmatpush.bf16.msra.mxu0 %v334_v0  ;;  %v342_v2 = vld [vmem:[#allocation7 + $0x38] sm:$0xff]  ;;  %v341_v3 = vld [vmem:[#allocation7 + $0x30] sm:$0xff]  ;;  %v332_v4 = vld [vmem:[#allocation5 + $0x28] sm:$0xff] }
  0x10   :  { %217 = vmatpush.bf16.msra.mxu1 %v342_v2  ;;  %v340_v5 = vld [vmem:[#allocation7 + $0x28] sm:$0xff]  ;;  %v331_v6 = vld [vmem:[#allocation5 + $0x20] sm:$0xff]  ;;  %v330_v8 = vld [vmem:[#allocation5 + $0x18] sm:$0xff]  ;;  %v231_v23 = vand.u32 127, %v230_v22 }
  0x11   :  { %v339_v7 = vld [vmem:[#allocation7 + $0x20] sm:$0xff]  ;;  %v338_v9 = vld [vmem:[#allocation7 + $0x18] sm:$0xff]  ;;  %v329_v10 = vld [vmem:[#allocation5 + $0x10] sm:$0xff] }
  0x12   :  { %v337_v11 = vld [vmem:[#allocation7 + $0x10] sm:$0xff]  ;;  %v328_v12 = vld [vmem:[#allocation5 + $0x8] sm:$0xff]  ;;  %v327_v14 = vld [vmem:[#allocation5] sm:$0xff]  ;;  %vm232_vm0 = vcmp.lt.s32.totalorder %v231_v23, 16 }
  0x13   :  { %136 = vmatpush.bf16.msra.mxu0 %v333_v1  ;;  %v336_v13 = vld [vmem:[#allocation7 + $0x8] sm:$0xff]  ;;  %v66_v15 = vld [vmem:[#allocation2] sm:$0xf]  ;;  %v335_v16 = vld [vmem:[#allocation7] sm:$0xff] }
  0x14   :  { %218 = vmatpush.bf16.msra.mxu1 %v341_v3  ;;  %v349_v17 = vld [vmem:[%s513_s2] ss:$0 sm:$0xff]  ;;  %s462_s2 = smov [#allocation8]  }
  0x15   :  { %v350_v24 = vld [vmem:[%s515_s4] ss:$0 sm:$0xff]  ;;  %s250_s11 = sshll.u32 %s462_s2, 4  ;;  %s252_s4 = sshll.u32 %s516_s5, 4  ;;  %s251_s11 = int_to_ptr.vmem [resolvable:$true] %s250_s11  ;;  %s253_s4 = int_to_ptr.hbm [resolvable:$true] %s252_s4 }
  0x17   :  { %137 = vmatpush.bf16.msra.mxu0 %v332_v4 }
  0x18   :  { %219 = vmatpush.bf16.msra.mxu1 %v340_v5 }
  0x1b   :  { %138 = vmatpush.bf16.msra.mxu0 %v331_v6 }
  0x1c   :  { %220 = vmatpush.bf16.msra.mxu1 %v339_v7 }
  0x1f   :  { %139 = vmatpush.bf16.msra.mxu0 %v330_v8 }
  0x20   :  { %221 = vmatpush.bf16.msra.mxu1 %v338_v9 }
  0x23   :  { %140 = vmatpush.bf16.msra.mxu0 %v329_v10 }
  0x24   :  { %222 = vmatpush.bf16.msra.mxu1 %v337_v11 }
  0x27   :  { %141 = vmatpush.bf16.msra.mxu0 %v328_v12 }
  0x28   :  { %223 = vmatpush.bf16.msra.mxu1 %v336_v13 }
  0x2b   :  { %142 = vmatpush.bf16.msra.mxu0 %v327_v14 }
  0x2c   :  { %224 = vmatpush.bf16.msra.mxu1 %v335_v16 }
  0x2e   :  { %143 = vmatmul.bf16.vlgmr.msra.gmra.mxu0 %v66_v15 }
  0xab   :  { %v144_v18 = vpop.f32.mrf.mxu0 }
  0xac   :  { %v145_v19 = vadd.f32 %v349_v17, %v144_v18 }
  0xae   :  { %v148_v20 = vpack.c.bf16 %v145_v19, %v145_v19 }
  0xb0   :  { %225 = vmatmul.bf16.vlgmr.msra.gmra.mxu1 %v148_v20 }
  0xb3   :  { %v146_v21 = vpop.f32.mrf.mxu0 }
 0x12d   :  { %v226_v25 = vpop.f32.mrf.mxu1 }
 0x12e   :  { %v227_v26 = vadd.f32 %v350_v24, %v226_v25 }
 0x130   :  { %v233_v27 = vsel %vm232_vm0, %v227_v26, -1e+30 }
 0x131   :  { %234 = vmax.xlane.f32.xlu0 %v233_v27 }
 0x135   :  { %v228_v28 = vpop.f32.mrf.mxu1 }
 0x1a4   :  { %v235_v29 = vpop.xlane.xlu0 %234 }
 0x1a5   :  { %v236_v30 = vsub.f32 %v233_v27, %v235_v29 }
 0x1a7   :  { %v237_v31 = vmul.f32 1.442695, %v236_v30 }
 0x1a9   :  { %351 = vpow2.f32 %v237_v31 }
 0x1af   :  { %v352_v32 = vpop.eup %351 }
 0x1b0   :  { %239 = vadd.xlane.f32.xlu0 %v352_v32 }
 0x223   :  { %v240_v33 = vpop.xlane.xlu0 %239 }
 0x224   :  { %353 = vlog2.f32 %v240_v33 }
 0x22a   :  { %v354_v34 = vpop.eup %353 }
 0x22b   :  { %v242_v35 = vmul.f32 0.6931472, %v354_v34 }
 0x22d   :  { %v243_v36 = vsub.f32 %v236_v30, %v242_v35 }
 0x22f   :  { %244 = vst [vmem:[#allocation8] sm:$0xff] %v243_v36 }
 0x230   :  { %255 = dma.vmem_to_hbm [thread:$0]  %s251_s11, 128, %s253_s4, [#allocation4]  }
 0x231   :  { %455 = dma.done.wait [#allocation4], 128  }
 0x232   :  { %456 = vsyncadd [#allocation4], 4294967168 }
 0x233   :  { %260 = vsyncpa [#allocation3], 1 }
 0x234   :  { %261 = vsyncpa [#allocation6], 1 }
 0x235   :  { %262 = vsyncpa [#allocation4], 1 }

</bundles_post_ra>
